<compile_context>
chip_gen: v7x
topology: tpu7x:2x2x1
jax: 0.10.0
libtpu: 0.0.40
codegen_flags: <defaults>
</compile_context>

<pallas_src>
import functools
import math

import jax
import jax.numpy as jnp
from jax.experimental import pallas as pl
from jax.experimental.pallas import tpu as pltpu


# ----------------------------------------------------------------------------
# Tile-size helpers (multiples of 128 for lanes / 8 for sublanes, or full dim)
# ----------------------------------------------------------------------------
def _pick_lane_tile(dim):
    for t in (768, 512, 384, 256, 128):
        if dim % t == 0:
            return t
    return dim                      # full extent (always legal)


def _pick_row_tile(dim):
    if dim <= 1024:
        return dim                  # full extent (always legal)
    for t in (1024, 512, 256, 128, 64, 32, 16, 8):
        if dim % t == 0:
            return t
    return dim


def _apply_activation(y, activation):
    if activation == "relu":
        return jnp.maximum(y, 0.0)
    if activation == "gelu":
        # tanh-approx GELU (EUP).  HF BERT uses erf-GELU; ~1e-3 relative diff.
        return 0.5 * y * (1.0 + jnp.tanh(
            0.7978845608028654 * (y + 0.044715 * y * y * y)))
    return y


# ----------------------------------------------------------------------------
# Tiled linear: y = act(x @ w + b)  [optionally + residual -> LayerNorm]
# bf16 MXU operands, f32 accumulation, bf16 output.
#   * multi_k=False (K fits one tile): no scratch, direct dot + epilogue.
#   * fuse_ln=True: requires tn == N (full rows per tile); residual add +
#     LayerNorm computed in the epilogue.
# ----------------------------------------------------------------------------
def _linear_kernel(*refs, activation, fuse_ln, multi_k, eps):
    if multi_k:
        refs, acc_ref = refs[:-1], refs[-1]
    if fuse_ln:
        x_ref, w_ref, b_ref, r_ref, g_ref, bb_ref, o_ref = refs
    else:
        x_ref, w_ref, b_ref, o_ref = refs
        r_ref = g_ref = bb_ref = None

    def epilogue(acc):
        y = acc + b_ref[...].astype(jnp.float32)
        y = _apply_activation(y, activation)
        if fuse_ln:
            y = y + r_ref[...].astype(jnp.float32)
            mean = jnp.mean(y, axis=-1, keepdims=True)
            yc = y - mean
            var = jnp.mean(yc * yc, axis=-1, keepdims=True)
            y = (yc * jax.lax.rsqrt(var + eps) * g_ref[...].astype(jnp.float32)
                 + bb_ref[...].astype(jnp.float32))
        o_ref[...] = y.astype(o_ref.dtype)

    if multi_k:
        @pl.when(pl.program_id(2) == 0)
        def _():
            acc_ref[...] = jnp.zeros_like(acc_ref)

        acc_ref[...] += jnp.dot(x_ref[...], w_ref[...],
                                preferred_element_type=jnp.float32)

        @pl.when(pl.program_id(2) == pl.num_programs(2) - 1)
        def _():
            epilogue(acc_ref[...])
    else:
        epilogue(jnp.dot(x_ref[...], w_ref[...],
                         preferred_element_type=jnp.float32))


def linear(x, w, b, activation=None, residual=None, ln_gamma=None,
           ln_beta=None, out_dtype=jnp.bfloat16, eps=1e-12):
    M, K = x.shape
    Kw, N = w.shape
    assert K == Kw
    fuse_ln = residual is not None

    tm = _pick_row_tile(M)
    tn = N if fuse_ln else _pick_lane_tile(N)   # LN fusion needs full rows
    tk = _pick_lane_tile(K)
    nk = pl.cdiv(K, tk)
    multi_k = nk > 1

    in_specs = [
        pl.BlockSpec((tm, tk), lambda i, j, k: (i, k)),
        pl.BlockSpec((tk, tn), lambda i, j, k: (k, j)),
        pl.BlockSpec((1, tn), lambda i, j, k: (0, j)),
    ]
    args = [x, w, b.reshape(1, N)]
    if fuse_ln:
        in_specs += [
            pl.BlockSpec((tm, tn), lambda i, j, k: (i, j)),
            pl.BlockSpec((1, tn), lambda i, j, k: (0, j)),
            pl.BlockSpec((1, tn), lambda i, j, k: (0, j)),
        ]
        args += [residual, ln_gamma.reshape(1, N), ln_beta.reshape(1, N)]

    scratch = [pltpu.VMEM((tm, tn), jnp.float32)] if multi_k else []

    return pl.pallas_call(
        functools.partial(_linear_kernel, activation=activation,
                          fuse_ln=fuse_ln, multi_k=multi_k, eps=eps),
        grid=(pl.cdiv(M, tm), pl.cdiv(N, tn), nk),
        out_shape=jax.ShapeDtypeStruct((M, N), out_dtype),
        in_specs=in_specs,
        out_specs=pl.BlockSpec((tm, tn), lambda i, j, k: (i, j)),
        scratch_shapes=scratch,
        compiler_params=pltpu.CompilerParams(
            dimension_semantics=("parallel", "parallel", "arbitrary")),
    )(*args)


# ----------------------------------------------------------------------------
# LayerNorm (embeddings) — stats in f32, bf16 output
# ----------------------------------------------------------------------------
def _layernorm_kernel(x_ref, g_ref, b_ref, o_ref, *, eps):
    x = x_ref[...].astype(jnp.float32)
    mean = jnp.mean(x, axis=-1, keepdims=True)
    xc = x - mean
    var = jnp.mean(xc * xc, axis=-1, keepdims=True)
    o_ref[...] = (xc * jax.lax.rsqrt(var + eps) * g_ref[...]
                  + b_ref[...]).astype(o_ref.dtype)


def layernorm(x, gamma, beta, eps=1e-12, out_dtype=jnp.bfloat16):
    M, D = x.shape
    tr = _pick_row_tile(M)
    return pl.pallas_call(
        functools.partial(_layernorm_kernel, eps=eps),
        grid=(pl.cdiv(M, tr),),
        out_shape=jax.ShapeDtypeStruct((M, D), out_dtype),
        in_specs=[
            pl.BlockSpec((tr, D), lambda i: (i, 0)),
            pl.BlockSpec((1, D), lambda i: (0, 0)),
            pl.BlockSpec((1, D), lambda i: (0, 0)),
        ],
        out_specs=pl.BlockSpec((tr, D), lambda i: (i, 0)),
        compiler_params=pltpu.CompilerParams(dimension_semantics=("parallel",)),
    )(x, gamma.reshape(1, D), beta.reshape(1, D))


# ----------------------------------------------------------------------------
# Attention block: grid (B, head_group).  Each step handles G heads,
# projects its context through the matching slice of W_o into a resident
# f32 (S, D) accumulator, and the last group fuses bias + residual + LayerNorm.
# Q/K/V are read directly from the fused (B*S, 3D) projection slab.
# ----------------------------------------------------------------------------
def _attn_kernel(q_ref, k_ref, v_ref, m_ref, wo_ref, bo_ref, res_ref,
                 lng_ref, lnb_ref, o_ref, acc_ref, *, G, Dh, scale, eps):
    hg = pl.program_id(1)

    @pl.when(hg == 0)
    def _():
        acc_ref[...] = jnp.zeros_like(acc_ref)

    S = q_ref.shape[0]

    def heads(ref):                                   # (S, G*Dh) -> (G, S, Dh)
        return ref[...].reshape(S, G, Dh).transpose(1, 0, 2)

    q = heads(q_ref)
    k = heads(k_ref)
    v = heads(v_ref)

    s = jnp.einsum("gqd,gkd->gqk", q, k,
                   preferred_element_type=jnp.float32)          # (G, S, S)
    s = s * scale + m_ref[0]                                    # (1, S) mask
    s = s - jnp.max(s, axis=-1, keepdims=True)
    p = jnp.exp(s)
    p = p * pl.reciprocal(jnp.sum(p, axis=-1, keepdims=True), approx=True)

    ctx = jnp.einsum("gqk,gkd->gqd", p.astype(jnp.bfloat16), v,
                     preferred_element_type=jnp.float32)        # (G, S, Dh)
    ctx = ctx.transpose(1, 0, 2).reshape(S, G * Dh).astype(jnp.bfloat16)

    # Partial output projection for this head group (accumulated over groups).
    acc_ref[...] += jnp.dot(ctx, wo_ref[...],
                            preferred_element_type=jnp.float32)

    @pl.when(hg == pl.num_programs(1) - 1)
    def _():
        y = (acc_ref[...] + bo_ref[...].astype(jnp.float32)
             + res_ref[...].astype(jnp.float32))
        mean = jnp.mean(y, axis=-1, keepdims=True)
        yc = y - mean
        var = jnp.mean(yc * yc, axis=-1, keepdims=True)
        o_ref[...] = (yc * jax.lax.rsqrt(var + eps)
                      * lng_ref[...].astype(jnp.float32)
                      + lnb_ref[...].astype(jnp.float32)).astype(o_ref.dtype)


def attention_block(qkv, mask_b, residual, wo, bo, ln_g, ln_b,
                    B, S, H, Dh, eps=1e-12):
    D = H * Dh
    # Heads per group: lane width G*Dh must be a multiple of 128.
    G = H
    for g in (4, 2, 8, H):
        if H % g == 0 and (g * Dh) % 128 == 0:
            G = g
            break
    HG = H // G
    scale = 1.0 / math.sqrt(Dh)
    # TODO(synk): for very long S, add flash-style KV blocking (online softmax)
    # on top of the head-group blocking so scores never exceed (G, S, tkv).
    return pl.pallas_call(
        functools.partial(_attn_kernel, G=G, Dh=Dh, scale=scale, eps=eps),
        grid=(B, HG),
        out_shape=jax.ShapeDtypeStruct((B * S, D), jnp.bfloat16),
        in_specs=[
            pl.BlockSpec((S, G * Dh), lambda b, g: (b, g)),            # Q
            pl.BlockSpec((S, G * Dh), lambda b, g: (b, HG + g)),       # K
            pl.BlockSpec((S, G * Dh), lambda b, g: (b, 2 * HG + g)),   # V
            pl.BlockSpec((1, 1, S), lambda b, g: (b, 0, 0)),           # mask
            pl.BlockSpec((G * Dh, D), lambda b, g: (g, 0)),            # W_o slice
            pl.BlockSpec((1, D), lambda b, g: (0, 0)),                 # b_o
            pl.BlockSpec((S, D), lambda b, g: (b, 0)),                 # residual
            pl.BlockSpec((1, D), lambda b, g: (0, 0)),                 # ln gamma
            pl.BlockSpec((1, D), lambda b, g: (0, 0)),                 # ln beta
        ],
        out_specs=pl.BlockSpec((S, D), lambda b, g: (b, 0)),
        scratch_shapes=[pltpu.VMEM((S, D), jnp.float32)],
        compiler_params=pltpu.CompilerParams(
            dimension_semantics=("parallel", "arbitrary")),
    )(qkv, qkv, qkv, mask_b, wo, bo.reshape(1, D), residual,
      ln_g.reshape(1, D), ln_b.reshape(1, D))


# ----------------------------------------------------------------------------
# Tiny classifier head: Linear(768,50)->ReLU->(Dropout=id)->Linear(50,2),
# lane-padded to 64 / 128 (zero-padded weights), fused into one kernel.
# ----------------------------------------------------------------------------
def _classifier_kernel(x_ref, w1_ref, b1_ref, w2_ref, b2_ref, o_ref):
    h = jnp.dot(x_ref[...], w1_ref[...],
                preferred_element_type=jnp.float32) + b1_ref[...]
    h = jnp.maximum(h, 0.0)
    o_ref[...] = jnp.dot(h.astype(jnp.bfloat16), w2_ref[...],
                         preferred_element_type=jnp.float32) + b2_ref[...]


def classifier_head(cls, w1, b1, w2, b2):
    B, D = cls.shape
    Dh = w1.shape[1]
    Do = w2.shape[1]
    return pl.pallas_call(
        _classifier_kernel,
        grid=(1,),
        out_shape=jax.ShapeDtypeStruct((B, Do), jnp.float32),
        in_specs=[
            pl.BlockSpec((B, D), lambda i: (0, 0)),
            pl.BlockSpec((D, Dh), lambda i: (0, 0)),
            pl.BlockSpec((1, Dh), lambda i: (0, 0)),
            pl.BlockSpec((Dh, Do), lambda i: (0, 0)),
            pl.BlockSpec((1, Do), lambda i: (0, 0)),
        ],
        out_specs=pl.BlockSpec((B, Do), lambda i: (0, 0)),
    )(cls, w1, b1.reshape(1, Dh), w2, b2.reshape(1, Do))


# ----------------------------------------------------------------------------
# Model (plain-JAX glue around the Pallas kernels)
# ----------------------------------------------------------------------------
def bert_layer(x, p, B, S, H, Dh, mask_b):
    # Fused QKV projection: one (D, 3D) matmul (single-K-step path).
    qkv = linear(x, p["w_qkv"], p["b_qkv"])                         # (B*S, 3D) bf16
    # Attention + W_o projection + residual + LayerNorm, fused.
    x = attention_block(qkv, mask_b, x, p["wo"], p["bo"],
                        p["ln1_g"], p["ln1_b"], B, S, H, Dh)        # (B*S, D) bf16
    # FFN: w1+gelu (single-K-step), then w2 with fused residual+LayerNorm.
    h = linear(x, p["w1"], p["b1"], activation="gelu")              # (B*S, 4D) bf16
    x = linear(h, p["w2"], p["b2"], residual=x,
               ln_gamma=p["ln2_g"], ln_beta=p["ln2_b"])             # (B*S, D) bf16
    return x


def bert_classifier_forward(params, cfg, input_ids, attention_mask):
    B, S = input_ids.shape
    D, H = cfg["hidden"], cfg["heads"]
    Dh = D // H

    # Embeddings (word + position + token_type(=0)) -> LayerNorm
    # (gather + adds are plain-JAX glue; LN runs in Pallas, emits bf16)
    emb = (params["word_emb"][input_ids]
           + params["pos_emb"][:S][None, :, :]
           + params["type_emb"][0][None, None, :])
    x = layernorm(emb.reshape(B * S, D), params["emb_ln_g"], params["emb_ln_b"])

    # HF-style extended additive mask, one (1, S) row per batch
    ext_mask = (1.0 - attention_mask.astype(jnp.float32)) * -10000.0  # (B, S)
    mask_b = ext_mask.reshape(B, 1, S)

    for layer_params in params["layers"]:
        x = bert_layer(x, layer_params, B, S, H, Dh, mask_b)

    # bert_output[0][:, 0, :]  ->  [CLS] hidden state
    cls = x.reshape(B, S, D)[:, 0, :]                                  # (B, D) bf16

    # classifier (Dropout identity in eval); output lanes padded to 128,
    # real logits are columns [:2].
    logits = classifier_head(cls, params["cls_w1"], params["cls_b1"],
                             params["cls_w2"], params["cls_b2"])
    return logits[:, :2]


# ----------------------------------------------------------------------------
# Deterministic parameter init (synthetic "bert-base-uncased"-shaped weights,
# scaled-down depth/vocab so the demo stays small).  Matmul weights stored
# bf16; biases / LN params / embeddings stay f32.  Classifier weights are
# zero-padded to lane-friendly widths (50->64 hidden, 2->128 out).
# ----------------------------------------------------------------------------
def init_params(key, cfg):
    D, I = cfg["hidden"], cfg["intermediate"]

    def nrm(k, shape, dtype=jnp.bfloat16):
        return (jax.random.normal(k, shape, jnp.float32) * 0.02).astype(dtype)

    keys = iter(jax.random.split(key, 256))

    cls_w1 = jnp.zeros((D, 64), jnp.bfloat16).at[:, :50].set(
        nrm(next(keys), (D, 50)))
    cls_w2 = jnp.zeros((64, 128), jnp.bfloat16).at[:50, :2].set(
        nrm(next(keys), (50, 2)))

    params = {
        "word_emb": nrm(next(keys), (cfg["vocab"], D), jnp.float32),
        "pos_emb": nrm(next(keys), (cfg["max_pos"], D), jnp.float32),
        "type_emb": nrm(next(keys), (2, D), jnp.float32),
        "emb_ln_g": jnp.ones((D,), jnp.float32),
        "emb_ln_b": jnp.zeros((D,), jnp.float32),
        "layers": [],
        "cls_w1": cls_w1,
        "cls_b1": jnp.zeros((64,), jnp.float32),
        "cls_w2": cls_w2,
        "cls_b2": jnp.zeros((128,), jnp.float32),
    }
    for _ in range(cfg["layers"]):
        wq = nrm(next(keys), (D, D))
        wk = nrm(next(keys), (D, D))
        wv = nrm(next(keys), (D, D))
        params["layers"].append({
            "w_qkv": jnp.concatenate([wq, wk, wv], axis=1),          # (D, 3D) bf16
            "b_qkv": jnp.zeros((3 * D,), jnp.float32),
            "wo": nrm(next(keys), (D, D)), "bo": jnp.zeros((D,), jnp.float32),
            "ln1_g": jnp.ones((D,), jnp.float32), "ln1_b": jnp.zeros((D,), jnp.float32),
            "w1": nrm(next(keys), (D, I)), "b1": jnp.zeros((I,), jnp.float32),
            "w2": nrm(next(keys), (I, D)), "b2": jnp.zeros((D,), jnp.float32),
            "ln2_g": jnp.ones((D,), jnp.float32), "ln2_b": jnp.zeros((D,), jnp.float32),
        })
    return params


if __name__ == "__main__":
    # Small config consistent with the module: classifier D_in=768, D_hidden=50,
    # D_out=2; BERT-base head geometry (12 heads x 64) but only 2 layers / tiny
    # vocab so the synthetic demo stays small.
    # TODO(synk): cross-layer weight prefetch (P10) and v7x fp8 weights not
    # implemented; weights are fetched tile-by-tile by the BlockSpec pipeline.
    cfg = dict(vocab=100, max_pos=32, hidden=768, heads=12, layers=2,
               intermediate=3072)

    key = jax.random.PRNGKey(0)
    k_param, k_ids = jax.random.split(key)
    params = init_params(k_param, cfg)

    B, S = 2, 8
    input_ids = jax.random.randint(k_ids, (B, S), 0, cfg["vocab"], dtype=jnp.int32)
    attention_mask = jnp.ones((B, S), jnp.int32).at[1, -2:].set(0)  # pad last 2 of sample 1

    logits = bert_classifier_forward(params, cfg, input_ids, attention_mask)
    logits = jax.block_until_ready(logits)
    assert logits.shape == (B, 2) and logits.dtype == jnp.float32
    assert bool(jnp.all(jnp.isfinite(logits)))
    print("KERNEL_OK")
</pallas_src>

<mosaic_0001>
module attributes {stable_mosaic.version = 11 : i64} {
  func.func @_layernorm_kernel(%arg0: i32, %arg1: memref<16x768xf32, #tpu.memory_space<vmem>>, %arg2: memref<1x768xf32, #tpu.memory_space<vmem>>, %arg3: memref<1x768xf32, #tpu.memory_space<vmem>>, %arg4: memref<16x768xbf16, #tpu.memory_space<vmem>>) attributes {dimension_semantics = [#tpu.dimension_semantics<parallel>], iteration_bounds = array<i64: 1>, scalar_prefetch = 0 : i64, scratch_operands = 0 : i64, tpu.core_type = #tpu.core_type<tc>, window_params = [{transform_indices = @transform_0, window_bounds = array<i64: 16, 768>}, {pipeline_mode = #tpu.pipeline_mode<synchronous>, transform_indices = @transform_1, window_bounds = array<i64: 1, 768>}, {pipeline_mode = #tpu.pipeline_mode<synchronous>, transform_indices = @transform_2, window_bounds = array<i64: 1, 768>}, {transform_indices = @transform_3, window_bounds = array<i64: 16, 768>}]} {
    %c0 = arith.constant 0 : index
    %c0_0 = arith.constant 0 : index
    %0 = vector.load %arg1[%c0, %c0_0] : memref<16x768xf32, #tpu.memory_space<vmem>>, vector<16x768xf32>
    %cst = arith.constant dense<0.000000e+00> : vector<16xf32>
    %1 = vector.multi_reduction <add>, %0, %cst [1] : vector<16x768xf32> to vector<16xf32>
    %2 = vector.shape_cast %1 : vector<16xf32> to vector<16x1xf32>
    %cst_1 = arith.constant 7.680000e+02 : f32
    %3 = vector.broadcast %cst_1 : f32 to vector<16x1xf32>
    %4 = arith.divf %2, %3 : vector<16x1xf32>
    %5 = vector.broadcast %4 : vector<16x1xf32> to vector<16x768xf32>
    %6 = arith.subf %0, %5 : vector<16x768xf32>
    %7 = arith.mulf %6, %6 : vector<16x768xf32>
    %cst_2 = arith.constant dense<0.000000e+00> : vector<16xf32>
    %8 = vector.multi_reduction <add>, %7, %cst_2 [1] : vector<16x768xf32> to vector<16xf32>
    %9 = vector.shape_cast %8 : vector<16xf32> to vector<16x1xf32>
    %cst_3 = arith.constant 7.680000e+02 : f32
    %10 = vector.broadcast %cst_3 : f32 to vector<16x1xf32>
    %11 = arith.divf %9, %10 : vector<16x1xf32>
    %cst_4 = arith.constant 9.99999996E-13 : f32
    %12 = vector.broadcast %cst_4 : f32 to vector<16x1xf32>
    %13 = arith.addf %11, %12 : vector<16x1xf32>
    %14 = math.rsqrt %13 : vector<16x1xf32>
    %15 = vector.broadcast %14 : vector<16x1xf32> to vector<16x768xf32>
    %16 = arith.mulf %6, %15 : vector<16x768xf32>
    %c0_5 = arith.constant 0 : index
    %c0_6 = arith.constant 0 : index
    %17 = vector.load %arg2[%c0_5, %c0_6] : memref<1x768xf32, #tpu.memory_space<vmem>>, vector<1x768xf32>
    %18 = vector.broadcast %17 : vector<1x768xf32> to vector<16x768xf32>
    %19 = arith.mulf %16, %18 : vector<16x768xf32>
    %c0_7 = arith.constant 0 : index
    %c0_8 = arith.constant 0 : index
    %20 = vector.load %arg3[%c0_7, %c0_8] : memref<1x768xf32, #tpu.memory_space<vmem>>, vector<1x768xf32>
    %21 = vector.broadcast %20 : vector<1x768xf32> to vector<16x768xf32>
    %22 = arith.addf %19, %21 : vector<16x768xf32>
    %23 = arith.truncf %22 : vector<16x768xf32> to vector<16x768xbf16>
    %c0_9 = arith.constant 0 : index
    %c0_10 = arith.constant 0 : index
    %24 = vector.load %arg4[%c0_9, %c0_10] : memref<16x768xbf16, #tpu.memory_space<vmem>>, vector<16x768xbf16>
    tpu.vector_store %arg4[%c0_9, %c0_10], %23 {strides = array<i32>} : memref<16x768xbf16, #tpu.memory_space<vmem>>, vector<16x768xbf16>,
    return
  }
  func.func @transform_0(%arg0: i32) -> (i32, i32) {
    %c0_i32 = arith.constant 0 : i32
    %c0_i32_0 = arith.constant 0 : i32
    return %arg0, %c0_i32 : i32, i32
  }
  func.func @transform_1(%arg0: i32) -> (i32, i32) {
    %c0_i32 = arith.constant 0 : i32
    %c0_i32_0 = arith.constant 0 : i32
    %c0_i32_1 = arith.constant 0 : i32
    return %c0_i32, %c0_i32_0 : i32, i32
  }
  func.func @transform_2(%arg0: i32) -> (i32, i32) {
    %c0_i32 = arith.constant 0 : i32
    %c0_i32_0 = arith.constant 0 : i32
    %c0_i32_1 = arith.constant 0 : i32
    return %c0_i32, %c0_i32_0 : i32, i32
  }
  func.func @transform_3(%arg0: i32) -> (i32, i32) {
    %c0_i32 = arith.constant 0 : i32
    %c0_i32_0 = arith.constant 0 : i32
    return %arg0, %c0_i32 : i32, i32
  }
}

</mosaic_0001>

<bundles_post_ra>
// kernel: tpu_custom_call.1
= control target key start
LH: loop header
LB: loop body
LE: loop exit
PB: predicated region body
PF: predicated region fallthrough
CT: control target
= control target key end

     0   :  { %8 = vsyncpa [#allocation3], 0  ;;  %s480_s0 = inlined_call_operand.hbm [shape: f32[16,768], index: 0, kind: input, shape index: {}]   ;;  %s481_s1 = inlined_call_operand.hbm [shape: f32[1,768], index: 1, kind: input, shape index: {}]   ;;  %s482_s2 = inlined_call_operand.vmem [shape: f32[1,768], index: 2, kind: input, shape index: {}]   ;;  %s483_s3 = inlined_call_operand.hbm [shape: bf16[16,768], index: 3, kind: output, shape index: {}]  }
   0x1   :  { %9 = vsyncpa [#allocation6], 0 }
   0x2   :  { %10 = vsyncpa [#allocation4], 0  ;;  %s369_s12 = smov [#allocation2]   ;;  %s297_s16 = scalar_lea.hbm %s480_s0, 1536 }
   0x3   :  { %s16_s13 = sshll.u32 %s369_s12, 4  ;;  %p298_p0 = scmp.ne.s32.totalorder %s480_s0, %s297_s16  ;;  %s17_s13 = int_to_ptr.vmem [resolvable:$true] %s16_s13 }
   0x4   :  { %p301_p1 = scmp.lt.u32.totalorder %s297_s16, %s480_s0 }
   0x6   :  { %p303_p2 = pnand %p301_p1, %p298_p0 }
   0x8   :  { %306 = shalt.err (!%p303_p2)
}
   0x9   :  { %s307_s21 = scalar_lea.vmem %s17_s13, 1536  ;;  %p312_p4 = scmp.lt.s32.totalorder %s17_s13, %s17_s13 }
   0xa   :  { %p308_p3 = scmp.ne.s32.totalorder %s17_s13, %s307_s21  ;;  %p313_p5 = scmp.lt.s32.totalorder %s307_s21, %s307_s21 }
   0xc   :  { %p314_p6 = por %p313_p5, %p312_p4 }
   0xe   :  { %p315_p7 = pnand %p314_p6, %p308_p3 }
  0x10   :  { %318 = shalt.err (!%p315_p7)
}
  0x11   :  { %s370_s22 = smov 768   ;;  %s371_s23 = smov 48  }
  0x12   :  { %22 = dma.hbm_to_vmem [thread:$0]  %s480_s0, 1536, %s17_s13, [#allocation3], %s370_s22, %s370_s22, %s371_s23  }
  0x13   :  { %s372_s26 = smov [#allocation5]   ;;  %s319_s30 = scalar_lea.hbm %s481_s1, 96 }
  0x14   :  { %s29_s27 = sshll.u32 %s372_s26, 4  ;;  %p320_p8 = scmp.ne.s32.totalorder %s481_s1, %s319_s30  ;;  %s30_s27 = int_to_ptr.vmem [resolvable:$true] %s29_s27 }
  0x15   :  { %p323_p9 = scmp.lt.u32.totalorder %s319_s30, %s481_s1 }
  0x17   :  { %p325_p10 = pnand %p323_p9, %p320_p8 }
  0x19   :  { %328 = shalt.err (!%p325_p10)
}
  0x1a   :  { %s329_s8 = scalar_lea.vmem %s30_s27, 96  ;;  %p334_p12 = scmp.lt.s32.totalorder %s30_s27, %s30_s27 }
  0x1b   :  { %p330_p11 = scmp.ne.s32.totalorder %s30_s27, %s329_s8  ;;  %p335_p13 = scmp.lt.s32.totalorder %s329_s8, %s329_s8 }
  0x1d   :  { %p336_p0 = por %p335_p13, %p334_p12 }
  0x1f   :  { %p337_p1 = pnand %p336_p0, %p330_p11 }
  0x21   :  { %340 = shalt.err (!%p337_p1)
}
  0x22   :  { %32 = dma.hbm_to_vmem [thread:$0]  %s481_s1, 96, %s30_s27, [#allocation6]  }
  0x23   :  { %363 = dma.done.wait [#allocation3], 1536  }
  0x24   :  { %364 = vsyncadd [#allocation3], 4294965760 }
  0x25   :  { %365 = dma.done.wait [#allocation6], 96  }
  0x26   :  { %366 = vsyncadd [#allocation6], 4294967200  ;;  %v41_v0 = vld [vmem:[#allocation2] sm:$0xff]  ;;  %v42_v1 = vld [vmem:[#allocation2 + $0x8] sm:$0xff]  ;;  %v128_v62 = vlaneseq }
  0x27   :  { %v43_v2 = vld [vmem:[#allocation2 + $0x10] sm:$0xff]  ;;  %v44_v3 = vld [vmem:[#allocation2 + $0x18] sm:$0xff]  ;;  %v53_v4 = vadd.f32 %v42_v1, %v41_v0  ;;  %v49_v7 = vld [vmem:[#allocation2 + $0x40] sm:$0xff] }
  0x28   :  { %v47_v5 = vld [vmem:[#allocation2 + $0x30] sm:$0xff]  ;;  %v48_v6 = vld [vmem:[#allocation2 + $0x38] sm:$0xff]  ;;  %v45_v10 = vld [vmem:[#allocation2 + $0x20] sm:$0xff] }
  0x29   :  { %v54_v8 = vadd.f32 %v53_v4, %v43_v2  ;;  %v60_v9 = vadd.f32 %v48_v6, %v47_v5  ;;  %v50_v11 = vld [vmem:[#allocation2 + $0x48] sm:$0xff]  ;;  %v51_v15 = vld [vmem:[#allocation2 + $0x50] sm:$0xff]  ;;  %v52_v18 = vld [vmem:[#allocation2 + $0x58] sm:$0xff] }
  0x2a   :  { %v46_v14 = vld [vmem:[#allocation2 + $0x28] sm:$0xff] }
  0x2b   :  { %v55_v12 = vadd.f32 %v54_v8, %v44_v3  ;;  %v61_v13 = vadd.f32 %v60_v9, %v49_v7  ;;  %v126_v8 = vld [vmem:[#allocation5] sm:$0x3f] }
  0x2d   :  { %v56_v16 = vadd.f32 %v55_v12, %v45_v10  ;;  %v62_v17 = vadd.f32 %v61_v13, %v50_v11 }
  0x2f   :  { %v57_v19 = vadd.f32 %v56_v16, %v46_v14  ;;  %v63_v20 = vadd.f32 %v62_v17, %v51_v15 }
  0x31   :  { %58 = vadd.xlane.f32.xlu0 %v57_v19  ;;  %v64_v21 = vadd.f32 %v63_v20, %v52_v18 }
  0x35   :  { %65 = vadd.xlane.f32.xlu0 %v64_v21 }
  0xbe   :  { %v59_v22 = vpop.xlane.xlu0 %58 }
  0xbf   :  { %v68_v23 = vmul.f32 0.0013020834, %v59_v22 }
  0xc1   :  { %v420_v24 = vsub.f32 %v41_v0, %v68_v23  ;;  %v422_v25 = vsub.f32 %v42_v1, %v68_v23  ;;  %v424_v26 = vsub.f32 %v43_v2, %v68_v23  ;;  %v426_v28 = vsub.f32 %v44_v3, %v68_v23 }
  0xc2   :  { %v66_v27 = vpop.xlane.xlu0 %65  ;;  %v74_v32 = vsub.f32 %v45_v10, %v68_v23  ;;  %v75_v38 = vsub.f32 %v46_v14, %v68_v23  ;;  %v129_v2 = vshrl.u32 %v128_v62, 7 }
  0xc3   :  { %v69_v29 = vmul.f32 0.0013020834, %v66_v27  ;;  %v82_v30 = vmul.f32 %v420_v24, %v420_v24  ;;  %v83_v31 = vmul.f32 %v422_v25, %v422_v25  ;;  %v84_v33 = vmul.f32 %v424_v26, %v424_v26 }
  0xc4   :  { %v85_v39 = vmul.f32 %v426_v28, %v426_v28  ;;  %v86_v44 = vmul.f32 %v74_v32, %v74_v32  ;;  %v87_v49 = vmul.f32 %v75_v38, %v75_v38  ;;  %v130_v4 = vsub.s32 0, %v129_v2 }
  0xc5   :  { %v94_v34 = vadd.f32 %v83_v31, %v82_v30  ;;  %v434_v35 = vsub.f32 %v47_v5, %v69_v29  ;;  %v436_v36 = vsub.f32 %v48_v6, %v69_v29  ;;  %v438_v37 = vsub.f32 %v49_v7, %v69_v29 }
  0xc6   :  { %v442_v41 = vsub.f32 %v50_v11, %v69_v29  ;;  %v448_v46 = vsub.f32 %v51_v15, %v69_v29  ;;  %v81_v51 = vsub.f32 %v52_v18, %v69_v29  ;;  %v134_v5 = vsub.s32 1, %v129_v2  ;;  %v170_v11 = vld [vmem:[%s482_s2] sm:$0x3f]  ;;  %s373_s2 = smov [#allocation7]  }
  0xc7   :  { %v95_v40 = vadd.f32 %v94_v34, %v84_v33  ;;  %v88_v42 = vmul.f32 %v434_v35, %v434_v35  ;;  %v89_v43 = vmul.f32 %v436_v36, %v436_v36  ;;  %v90_v47 = vmul.f32 %v438_v37, %v438_v37  ;;  %s261_s11 = sshll.u32 %s373_s2, 4  ;;  %s262_s11 = int_to_ptr.vmem [resolvable:$true] %s261_s11 }
  0xc8   :  { %v91_v52 = vmul.f32 %v442_v41, %v442_v41  ;;  %v92_v55 = vmul.f32 %v448_v46, %v448_v46  ;;  %v93_v57 = vmul.f32 %v81_v51, %v81_v51  ;;  %v138_v6 = vsub.s32 2, %v129_v2  ;;  %s341_s12 = scalar_lea.vmem %s262_s11, 768  ;;  %p346_p3 = scmp.lt.s32.totalorder %s262_s11, %s262_s11 }
  0xc9   :  { %v96_v45 = vadd.f32 %v95_v40, %v85_v39  ;;  %v101_v48 = vadd.f32 %v89_v43, %v88_v42  ;;  %v142_v7 = vsub.s32 3, %v129_v2  ;;  %v146_v9 = vsub.s32 4, %v129_v2  ;;  %p342_p2 = scmp.ne.s32.totalorder %s262_s11, %s341_s12  ;;  %p347_p4 = scmp.lt.s32.totalorder %s341_s12, %s341_s12 }
  0xca   :  { %v150_v10 = vsub.s32 5, %v129_v2  ;;  %v131_v12 = vrot.slane %v126_v8, %v130_v4  ;;  %v135_v13 = vrot.slane %v126_v8, %v134_v5  ;;  %v139_v14 = vrot.slane %v126_v8, %v138_v6 }
  0xcb   :  { %v97_v50 = vadd.f32 %v96_v45, %v86_v44  ;;  %v102_v53 = vadd.f32 %v101_v48, %v90_v47  ;;  %v143_v15 = vrot.slane %v126_v8, %v142_v7  ;;  %v147_v17 = vrot.slane %v126_v8, %v146_v9  ;;  %p348_p5 = por %p347_p4, %p346_p3 }
  0xcc   :  { %v151_v18 = vrot.slane %v126_v8, %v150_v10  ;;  %v175_v19 = vrot.slane %v170_v11, %v130_v4  ;;  %v179_v20 = vrot.slane %v170_v11, %v134_v5  ;;  %v183_v31 = vrot.slane %v170_v11, %v138_v6 }
  0xcd   :  { %v98_v54 = vadd.f32 %v97_v50, %v87_v49  ;;  %v103_v56 = vadd.f32 %v102_v53, %v91_v52  ;;  %v187_v33 = vrot.slane %v170_v11, %v142_v7  ;;  %v191_v40 = vrot.slane %v170_v11, %v146_v9  ;;  %p349_p6 = pnand %p348_p5, %p342_p2 }
  0xce   :  { %v195_v42 = vrot.slane %v170_v11, %v150_v10 }
  0xcf   :  { %99 = vadd.xlane.f32.xlu1 %v98_v54  ;;  %v104_v58 = vadd.f32 %v103_v56, %v92_v55 }
  0xd1   :  { %v105_v59 = vadd.f32 %v104_v58, %v93_v57 }
  0xd3   :  { %106 = vadd.xlane.f32.xlu1 %v105_v59 }
 0x15c   :  { %v100_v60 = vpop.xlane.xlu1 %99 }
 0x15d   :  { %v108_v61 = vmul.f32 0.0013020834, %v100_v60 }
 0x15f   :  { %v110_v63 = vadd.f32 1e-12, %v108_v61 }
 0x160   :  { %v107_v0 = vpop.xlane.xlu1 %106 }
 0x161   :  { %293 = vrsqrt.f32 %v110_v63  ;;  %v109_v1 = vmul.f32 0.0013020834, %v107_v0 }
 0x163   :  { %v111_v3 = vadd.f32 1e-12, %v109_v1 }
 0x165   :  { %295 = vrsqrt.f32 %v111_v3 }
 0x16b   :  { %v294_v16 = vpop.eup %293 }
 0x16c   :  { %v114_v21 = vmul.f32 %v294_v16, %v420_v24  ;;  %v115_v22 = vmul.f32 %v294_v16, %v422_v25  ;;  %v116_v23 = vmul.f32 %v294_v16, %v424_v26  ;;  %v117_v27 = vmul.f32 %v294_v16, %v426_v28 }
 0x16d   :  { %v118_v29 = vmul.f32 %v294_v16, %v74_v32  ;;  %v119_v30 = vmul.f32 %v294_v16, %v75_v38 }
 0x16e   :  { %v158_v34 = vmul.f32 %v131_v12, %v114_v21  ;;  %v159_v39 = vmul.f32 %v135_v13, %v115_v22  ;;  %v160_v44 = vmul.f32 %v139_v14, %v116_v23  ;;  %v161_v45 = vmul.f32 %v143_v15, %v117_v27 }
 0x16f   :  { %v296_v43 = vpop.eup %295  ;;  %v162_v47 = vmul.f32 %v147_v17, %v118_v29  ;;  %v163_v48 = vmul.f32 %v151_v18, %v119_v30 }
 0x170   :  { %v120_v24 = vmul.f32 %v296_v43, %v434_v35  ;;  %v121_v25 = vmul.f32 %v296_v43, %v436_v36  ;;  %v122_v26 = vmul.f32 %v296_v43, %v438_v37  ;;  %v123_v28 = vmul.f32 %v296_v43, %v442_v41 }
 0x171   :  { %v124_v32 = vmul.f32 %v296_v43, %v448_v46  ;;  %v125_v38 = vmul.f32 %v296_v43, %v81_v51  ;;  %v202_v49 = vadd.f32 %v175_v19, %v158_v34  ;;  %v203_v50 = vadd.f32 %v179_v20, %v159_v39 }
 0x172   :  { %v164_v52 = vmul.f32 %v131_v12, %v120_v24  ;;  %v165_v53 = vmul.f32 %v135_v13, %v121_v25  ;;  %v166_v54 = vmul.f32 %v139_v14, %v122_v26  ;;  %v167_v55 = vmul.f32 %v143_v15, %v123_v28 }
 0x173   :  { %v168_v56 = vmul.f32 %v147_v17, %v124_v32  ;;  %v169_v57 = vmul.f32 %v151_v18, %v125_v38  ;;  %v204_v58 = vadd.f32 %v183_v31, %v160_v44  ;;  %v205_v59 = vadd.f32 %v187_v33, %v161_v45 }
 0x174   :  { %v206_v35 = vadd.f32 %v191_v40, %v162_v47  ;;  %v207_v60 = vadd.f32 %v195_v42, %v163_v48  ;;  %v208_v36 = vadd.f32 %v175_v19, %v164_v52  ;;  %v209_v61 = vadd.f32 %v179_v20, %v165_v53 }
 0x175   :  { %v210_v37 = vadd.f32 %v183_v31, %v166_v54  ;;  %v211_v41 = vadd.f32 %v187_v33, %v167_v55  ;;  %v212_v46 = vadd.f32 %v191_v40, %v168_v56  ;;  %v213_v51 = vadd.f32 %v195_v42, %v169_v57 }
 0x176   :  { %v280_v62 = vpack.c.bf16 %v203_v50, %v202_v49  ;;  %v281_v63 = vpack.c.bf16 %v205_v59, %v204_v58  ;;  %v282_v0 = vpack.c.bf16 %v207_v60, %v206_v35  ;;  %v283_v1 = vpack.c.bf16 %v209_v61, %v208_v36 }
 0x177   :  { %v284_v2 = vpack.c.bf16 %v211_v41, %v210_v37  ;;  %v285_v3 = vpack.c.bf16 %v213_v51, %v212_v46 }
 0x178   :  { %250 = vst [vmem:[#allocation7] sm:$0xff] %v280_v62  ;;  %251 = vst [vmem:[#allocation7 + $0x8] sm:$0xff] %v281_v63 }
 0x179   :  { %252 = vst [vmem:[#allocation7 + $0x10] sm:$0xff] %v282_v0  ;;  %253 = vst [vmem:[#allocation7 + $0x18] sm:$0xff] %v283_v1 }
 0x17a   :  { %254 = vst [vmem:[#allocation7 + $0x20] sm:$0xff] %v284_v2  ;;  %255 = vst [vmem:[#allocation7 + $0x28] sm:$0xff] %v285_v3 }
 0x17b   :  { %352 = shalt.err (!%p349_p6)
}
 0x17c   :  { %s353_s15 = scalar_lea.hbm %s483_s3, 768 }
 0x17d   :  { %p354_p7 = scmp.ne.s32.totalorder %s483_s3, %s353_s15  ;;  %p357_p8 = scmp.lt.u32.totalorder %s353_s15, %s483_s3 }
 0x17f   :  { %p359_p9 = pnand %p357_p8, %p354_p7 }
 0x181   :  { %362 = shalt.err (!%p359_p9)
}
 0x182   :  { %s374_s20 = smov 384   ;;  %s375_s21 = smov 24  }
 0x183   :  { %267 = dma.vmem_to_hbm [thread:$0]  %s262_s11, 768, %s483_s3, [#allocation4], %s374_s20, %s374_s20, %s375_s21  }
 0x184   :  { %367 = dma.done.wait [#allocation4], 768  }
 0x185   :  { %368 = vsyncadd [#allocation4], 4294966528 }
 0x186   :  { %271 = vsyncpa [#allocation3], 1 }
 0x187   :  { %272 = vsyncpa [#allocation6], 1 }
 0x188   :  { %273 = vsyncpa [#allocation4], 1 }

</bundles_post_ra>
